<compile_context>
chip_gen: v7x
topology: tpu7x:2x2x1
jax: 0.10.0
libtpu: 0.0.40
codegen_flags: <defaults>
</compile_context>

<pallas_src>
import math

import jax
import jax.numpy as jnp
from jax.experimental import pallas as pl
from jax.experimental.pallas import tpu as pltpu

LN_EPS = 1e-5  # torch.nn.LayerNorm default


def addnorm_kernel(x_ref, y_ref, gamma_ref, beta_ref, o_ref):
    # TODO(synk): nn.Dropout runs in eval mode here (identity); training-mode
    # stochastic masking would use pltpu.prng_seed/prng_random_bits.
    s = y_ref[...] + x_ref[...]                              # dropout(Y) + X
    mean = jnp.mean(s, axis=-1, keepdims=True)               # biased stats, like torch
    var = jnp.mean((s - mean) ** 2, axis=-1, keepdims=True)
    inv = jax.lax.rsqrt(var + LN_EPS)
    o_ref[...] = (s - mean) * inv * gamma_ref[...] + beta_ref[...]


def add_norm(x, y, gamma, beta, *, block_rows=512):
    """out = LayerNorm(dropout(Y) + X), normalized over the last dim."""
    assert x.shape == y.shape
    hidden = x.shape[-1]
    assert gamma.shape == (hidden,) and beta.shape == (hidden,)

    rows = math.prod(x.shape[:-1])
    x2 = x.reshape(rows, hidden)
    y2 = y.reshape(rows, hidden)

    # Row tile: as large as possible (mem-bound), sublane-aligned via padding.
    blk = min(block_rows, rows)
    padded_rows = pl.cdiv(rows, blk) * blk
    if padded_rows != rows:
        pad = padded_rows - rows
        x2 = jnp.pad(x2, ((0, pad), (0, 0)))
        y2 = jnp.pad(y2, ((0, pad), (0, 0)))
    grid = (padded_rows // blk,)

    elem_bytes = jnp.dtype(x.dtype).itemsize
    cost = pl.CostEstimate(
        flops=8 * padded_rows * hidden,           # add + mean + var + normalize/affine
        transcendentals=padded_rows,              # one rsqrt per row
        bytes_accessed=3 * padded_rows * hidden * elem_bytes,
    )

    out = pl.pallas_call(
        addnorm_kernel,
        out_shape=jax.ShapeDtypeStruct((padded_rows, hidden), x.dtype),
        grid=grid,
        in_specs=[
            pl.BlockSpec((blk, hidden), lambda i: (i, 0)),   # X rows slab
            pl.BlockSpec((blk, hidden), lambda i: (i, 0)),   # Y rows slab
            pl.BlockSpec((1, hidden), lambda i: (0, 0)),     # gamma (shared)
            pl.BlockSpec((1, hidden), lambda i: (0, 0)),     # beta  (shared)
        ],
        out_specs=pl.BlockSpec((blk, hidden), lambda i: (i, 0)),
        compiler_params=pltpu.CompilerParams(
            dimension_semantics=("parallel",)),
        cost_estimate=cost,
    )(x2, y2, gamma.reshape(1, hidden), beta.reshape(1, hidden))

    return out[:rows].reshape(x.shape)


# ---------------- pure-JAX reference (matches torch semantics in eval mode) ---
def reference_addnorm(x, y, gamma, beta):
    s = y + x
    mean = jnp.mean(s, axis=-1, keepdims=True)
    var = jnp.mean((s - mean) ** 2, axis=-1, keepdims=True)
    return (s - mean) * jax.lax.rsqrt(var + LN_EPS) * gamma + beta


if __name__ == "__main__":
    BATCH, SEQ, HIDDEN = 2, 8, 256   # small shapes; HIDDEN lane-dense (2 x 128)

    key = jax.random.PRNGKey(0)
    kx, ky, kg, kb = jax.random.split(key, 4)
    x = jax.random.normal(kx, (BATCH, SEQ, HIDDEN), jnp.float32)
    y = jax.random.normal(ky, (BATCH, SEQ, HIDDEN), jnp.float32)
    gamma = 1.0 + 0.1 * jax.random.normal(kg, (HIDDEN,), jnp.float32)
    beta = 0.1 * jax.random.normal(kb, (HIDDEN,), jnp.float32)

    out = jax.block_until_ready(add_norm(x, y, gamma, beta))
    ref = reference_addnorm(x, y, gamma, beta)

    assert out.shape == (BATCH, SEQ, HIDDEN)
    assert jnp.allclose(out, ref, rtol=1e-5, atol=1e-4), (
        f"max abs diff {float(jnp.max(jnp.abs(out - ref)))}")
    print("KERNEL_OK")
</pallas_src>

<mosaic_0001>
module attributes {stable_mosaic.version = 11 : i64} {
  func.func @addnorm_kernel(%arg0: i32, %arg1: memref<16x256xf32, #tpu.memory_space<vmem>>, %arg2: memref<16x256xf32, #tpu.memory_space<vmem>>, %arg3: memref<1x256xf32, #tpu.memory_space<vmem>>, %arg4: memref<1x256xf32, #tpu.memory_space<vmem>>, %arg5: memref<16x256xf32, #tpu.memory_space<vmem>>) attributes {dimension_semantics = [#tpu.dimension_semantics<parallel>], iteration_bounds = array<i64: 1>, scalar_prefetch = 0 : i64, scratch_operands = 0 : i64, tpu.core_type = #tpu.core_type<tc>, window_params = [{transform_indices = @transform_0, window_bounds = array<i64: 16, 256>}, {transform_indices = @transform_1, window_bounds = array<i64: 16, 256>}, {pipeline_mode = #tpu.pipeline_mode<synchronous>, transform_indices = @transform_2, window_bounds = array<i64: 1, 256>}, {pipeline_mode = #tpu.pipeline_mode<synchronous>, transform_indices = @transform_3, window_bounds = array<i64: 1, 256>}, {transform_indices = @transform_4, window_bounds = array<i64: 16, 256>}]} {
    %c0 = arith.constant 0 : index
    %c0_0 = arith.constant 0 : index
    %0 = vector.load %arg2[%c0, %c0_0] : memref<16x256xf32, #tpu.memory_space<vmem>>, vector<16x256xf32>
    %c0_1 = arith.constant 0 : index
    %c0_2 = arith.constant 0 : index
    %1 = vector.load %arg1[%c0_1, %c0_2] : memref<16x256xf32, #tpu.memory_space<vmem>>, vector<16x256xf32>
    %2 = arith.addf %0, %1 : vector<16x256xf32>
    %cst = arith.constant dense<0.000000e+00> : vector<16xf32>
    %3 = vector.multi_reduction <add>, %2, %cst [1] : vector<16x256xf32> to vector<16xf32>
    %4 = vector.shape_cast %3 : vector<16xf32> to vector<16x1xf32>
    %cst_3 = arith.constant 2.560000e+02 : f32
    %5 = vector.broadcast %cst_3 : f32 to vector<16x1xf32>
    %6 = arith.divf %4, %5 : vector<16x1xf32>
    %7 = vector.broadcast %6 : vector<16x1xf32> to vector<16x256xf32>
    %8 = arith.subf %2, %7 : vector<16x256xf32>
    %9 = arith.mulf %8, %8 : vector<16x256xf32>
    %cst_4 = arith.constant dense<0.000000e+00> : vector<16xf32>
    %10 = vector.multi_reduction <add>, %9, %cst_4 [1] : vector<16x256xf32> to vector<16xf32>
    %11 = vector.shape_cast %10 : vector<16xf32> to vector<16x1xf32>
    %cst_5 = arith.constant 2.560000e+02 : f32
    %12 = vector.broadcast %cst_5 : f32 to vector<16x1xf32>
    %13 = arith.divf %11, %12 : vector<16x1xf32>
    %cst_6 = arith.constant 9.99999974E-6 : f32
    %14 = vector.broadcast %cst_6 : f32 to vector<16x1xf32>
    %15 = arith.addf %13, %14 : vector<16x1xf32>
    %16 = math.rsqrt %15 : vector<16x1xf32>
    %17 = vector.broadcast %6 : vector<16x1xf32> to vector<16x256xf32>
    %18 = arith.subf %2, %17 : vector<16x256xf32>
    %19 = vector.broadcast %16 : vector<16x1xf32> to vector<16x256xf32>
    %20 = arith.mulf %18, %19 : vector<16x256xf32>
    %c0_7 = arith.constant 0 : index
    %c0_8 = arith.constant 0 : index
    %21 = vector.load %arg3[%c0_7, %c0_8] : memref<1x256xf32, #tpu.memory_space<vmem>>, vector<1x256xf32>
    %22 = vector.broadcast %21 : vector<1x256xf32> to vector<16x256xf32>
    %23 = arith.mulf %20, %22 : vector<16x256xf32>
    %c0_9 = arith.constant 0 : index
    %c0_10 = arith.constant 0 : index
    %24 = vector.load %arg4[%c0_9, %c0_10] : memref<1x256xf32, #tpu.memory_space<vmem>>, vector<1x256xf32>
    %25 = vector.broadcast %24 : vector<1x256xf32> to vector<16x256xf32>
    %26 = arith.addf %23, %25 : vector<16x256xf32>
    %c0_11 = arith.constant 0 : index
    %c0_12 = arith.constant 0 : index
    %27 = vector.load %arg5[%c0_11, %c0_12] : memref<16x256xf32, #tpu.memory_space<vmem>>, vector<16x256xf32>
    tpu.vector_store %arg5[%c0_11, %c0_12], %26 {strides = array<i32>} : memref<16x256xf32, #tpu.memory_space<vmem>>, vector<16x256xf32>,
    return
  }
  func.func @transform_0(%arg0: i32) -> (i32, i32) {
    %c0_i32 = arith.constant 0 : i32
    %c0_i32_0 = arith.constant 0 : i32
    return %arg0, %c0_i32 : i32, i32
  }
  func.func @transform_1(%arg0: i32) -> (i32, i32) {
    %c0_i32 = arith.constant 0 : i32
    %c0_i32_0 = arith.constant 0 : i32
    return %arg0, %c0_i32 : i32, i32
  }
  func.func @transform_2(%arg0: i32) -> (i32, i32) {
    %c0_i32 = arith.constant 0 : i32
    %c0_i32_0 = arith.constant 0 : i32
    %c0_i32_1 = arith.constant 0 : i32
    return %c0_i32, %c0_i32_0 : i32, i32
  }
  func.func @transform_3(%arg0: i32) -> (i32, i32) {
    %c0_i32 = arith.constant 0 : i32
    %c0_i32_0 = arith.constant 0 : i32
    %c0_i32_1 = arith.constant 0 : i32
    return %c0_i32, %c0_i32_0 : i32, i32
  }
  func.func @transform_4(%arg0: i32) -> (i32, i32) {
    %c0_i32 = arith.constant 0 : i32
    %c0_i32_0 = arith.constant 0 : i32
    return %arg0, %c0_i32 : i32, i32
  }
}

</mosaic_0001>

<bundles_post_ra>
// kernel: tpu_custom_call.1
= control target key start
LH: loop header
LB: loop body
LE: loop exit
PB: predicated region body
PF: predicated region fallthrough
CT: control target
= control target key end

     0   :  { %9 = vsyncpa [#allocation3], 0  ;;  %s307_s0 = inlined_call_operand.hbm [shape: f32[16,256], index: 0, kind: input, shape index: {}]   ;;  %s308_s1 = inlined_call_operand.hbm [shape: f32[16,256], index: 1, kind: input, shape index: {}]   ;;  %s309_s2 = inlined_call_operand.vmem [shape: f32[1,256], index: 2, kind: input, shape index: {}]   ;;  %s310_s3 = inlined_call_operand.vmem [shape: f32[1,256], index: 3, kind: input, shape index: {}]   ;;  %s311_s4 = inlined_call_operand.hbm [shape: f32[16,256], index: 4, kind: output, shape index: {}]  }
   0x1   :  { %10 = vsyncpa [#allocation6], 0 }
   0x2   :  { %11 = vsyncpa [#allocation4], 0  ;;  %s226_s15 = smov [#allocation2]   ;;  %s154_s19 = scalar_lea.hbm %s307_s0, 512 }
   0x3   :  { %s17_s16 = sshll.u32 %s226_s15, 4  ;;  %p155_p0 = scmp.ne.s32.totalorder %s307_s0, %s154_s19  ;;  %s18_s16 = int_to_ptr.vmem [resolvable:$true] %s17_s16 }
   0x4   :  { %p158_p1 = scmp.lt.u32.totalorder %s154_s19, %s307_s0 }
   0x6   :  { %p160_p2 = pnand %p158_p1, %p155_p0 }
   0x8   :  { %163 = shalt.err (!%p160_p2)
}
   0x9   :  { %s164_s24 = scalar_lea.vmem %s18_s16, 512  ;;  %p169_p4 = scmp.lt.s32.totalorder %s18_s16, %s18_s16 }
   0xa   :  { %p165_p3 = scmp.ne.s32.totalorder %s18_s16, %s164_s24  ;;  %p170_p5 = scmp.lt.s32.totalorder %s164_s24, %s164_s24 }
   0xc   :  { %p171_p6 = por %p170_p5, %p169_p4 }
   0xe   :  { %p172_p7 = pnand %p171_p6, %p165_p3 }
  0x10   :  { %175 = shalt.err (!%p172_p7)
}
  0x11   :  { %s227_s25 = smov 256   ;;  %s228_s26 = smov 16  }
  0x12   :  { %23 = dma.hbm_to_vmem [thread:$0]  %s307_s0, 512, %s18_s16, [#allocation3], %s227_s25, %s227_s25, %s228_s26  }
  0x13   :  { %s229_s29 = smov [#allocation5]   ;;  %s176_s7 = scalar_lea.hbm %s308_s1, 512 }
  0x14   :  { %s29_s30 = sshll.u32 %s229_s29, 4  ;;  %p177_p8 = scmp.ne.s32.totalorder %s308_s1, %s176_s7  ;;  %s30_s30 = int_to_ptr.vmem [resolvable:$true] %s29_s30 }
  0x15   :  { %p180_p9 = scmp.lt.u32.totalorder %s176_s7, %s308_s1 }
  0x17   :  { %p182_p10 = pnand %p180_p9, %p177_p8 }
  0x19   :  { %185 = shalt.err (!%p182_p10)
}
  0x1a   :  { %s186_s12 = scalar_lea.vmem %s30_s30, 512  ;;  %p191_p12 = scmp.lt.s32.totalorder %s30_s30, %s30_s30 }
  0x1b   :  { %p187_p11 = scmp.ne.s32.totalorder %s30_s30, %s186_s12  ;;  %p192_p13 = scmp.lt.s32.totalorder %s186_s12, %s186_s12 }
  0x1d   :  { %p193_p0 = por %p192_p13, %p191_p12 }
  0x1f   :  { %p194_p1 = pnand %p193_p0, %p187_p11 }
  0x21   :  { %197 = shalt.err (!%p194_p1)
}
  0x22   :  { %35 = dma.hbm_to_vmem [thread:$0]  %s308_s1, 512, %s30_s30, [#allocation6], %s227_s25, %s227_s25, %s228_s26  }
  0x23   :  { %220 = dma.done.wait [#allocation3], 512  }
  0x24   :  { %221 = vsyncadd [#allocation3], 4294966784 }
  0x25   :  { %222 = dma.done.wait [#allocation6], 512  }
  0x26   :  { %223 = vsyncadd [#allocation6], 4294966784  ;;  %v46_v0 = vld [vmem:[#allocation5] sm:$0xff]  ;;  %v47_v1 = vld [vmem:[#allocation5 + $0x8] sm:$0xff]  ;;  %v93_v30 = vlaneseq  ;;  %s230_s17 = smov [#allocation7]  }
  0x27   :  { %v50_v2 = vld [vmem:[#allocation2] sm:$0xff]  ;;  %v51_v3 = vld [vmem:[#allocation2 + $0x8] sm:$0xff]  ;;  %v48_v5 = vld [vmem:[#allocation5 + $0x10] sm:$0xff] }
  0x28   :  { %v54_v4 = vadd.f32 %v50_v2, %v46_v0  ;;  %v49_v6 = vld [vmem:[#allocation5 + $0x18] sm:$0xff]  ;;  %v55_v7 = vadd.f32 %v51_v3, %v47_v1  ;;  %v52_v8 = vld [vmem:[#allocation2 + $0x10] sm:$0xff]  ;;  %v94_v34 = vshrl.u32 %v93_v30, 7  ;;  %v91_v38 = vld [vmem:[%s309_s2] sm:$0x3]  ;;  %s132_s2 = sshll.u32 %s230_s17, 4  ;;  %s133_s2 = int_to_ptr.vmem [resolvable:$true] %s132_s2 }
  0x29   :  { %v53_v9 = vld [vmem:[#allocation2 + $0x18] sm:$0xff]  ;;  %v56_v10 = vadd.f32 %v52_v8, %v48_v5  ;;  %v107_v39 = vld [vmem:[%s310_s3] sm:$0x3]  ;;  %s198_s3 = scalar_lea.vmem %s133_s2, 512  ;;  %p203_p3 = scmp.lt.s32.totalorder %s133_s2, %s133_s2 }
  0x2a   :  { %v57_v11 = vadd.f32 %v53_v9, %v49_v6  ;;  %v58_v12 = vadd.f32 %v55_v7, %v54_v4  ;;  %v95_v36 = vsub.s32 0, %v94_v34  ;;  %v99_v37 = vsub.s32 1, %v94_v34  ;;  %p199_p2 = scmp.ne.s32.totalorder %s133_s2, %s198_s3  ;;  %p204_p4 = scmp.lt.s32.totalorder %s198_s3, %s198_s3 }
  0x2c   :  { %59 = vadd.xlane.f32.xlu0 %v58_v12  ;;  %v61_v13 = vadd.f32 %v57_v11, %v56_v10  ;;  %v96_v40 = vrot.slane %v91_v38, %v95_v36  ;;  %v100_v41 = vrot.slane %v91_v38, %v99_v37  ;;  %v112_v45 = vrot.slane %v107_v39, %v95_v36  ;;  %p205_p5 = por %p204_p4, %p203_p3 }
  0x2d   :  { %v116_v46 = vrot.slane %v107_v39, %v99_v37 }
  0x2e   :  { %p206_p6 = pnand %p205_p5, %p199_p2 }
  0x30   :  { %62 = vadd.xlane.f32.xlu0 %v61_v13 }
  0xb9   :  { %v60_v14 = vpop.xlane.xlu0 %59 }
  0xba   :  { %v65_v15 = vmul.f32 0.00390625, %v60_v14 }
  0xbc   :  { %v67_v16 = vsub.f32 %v54_v4, %v65_v15  ;;  %v68_v17 = vsub.f32 %v55_v7, %v65_v15 }
  0xbd   :  { %v63_v18 = vpop.xlane.xlu0 %62 }
  0xbe   :  { %v66_v19 = vmul.f32 0.00390625, %v63_v18  ;;  %v71_v20 = vmul.f32 %v67_v16, %v67_v16  ;;  %v72_v21 = vmul.f32 %v68_v17, %v68_v17 }
  0xc0   :  { %v69_v22 = vsub.f32 %v56_v10, %v66_v19  ;;  %v70_v23 = vsub.f32 %v57_v11, %v66_v19  ;;  %v75_v24 = vadd.f32 %v72_v21, %v71_v20 }
  0xc2   :  { %76 = vadd.xlane.f32.xlu1 %v75_v24  ;;  %v73_v25 = vmul.f32 %v69_v22, %v69_v22  ;;  %v74_v26 = vmul.f32 %v70_v23, %v70_v23 }
  0xc4   :  { %v78_v27 = vadd.f32 %v74_v26, %v73_v25 }
  0xc6   :  { %79 = vadd.xlane.f32.xlu1 %v78_v27 }
 0x14f   :  { %v77_v28 = vpop.xlane.xlu1 %76 }
 0x150   :  { %v81_v29 = vmul.f32 0.00390625, %v77_v28 }
 0x152   :  { %v83_v31 = vadd.f32 1e-05, %v81_v29 }
 0x153   :  { %v80_v32 = vpop.xlane.xlu1 %79 }
 0x154   :  { %150 = vrsqrt.f32 %v83_v31  ;;  %v82_v33 = vmul.f32 0.00390625, %v80_v32 }
 0x156   :  { %v84_v35 = vadd.f32 1e-05, %v82_v33 }
 0x158   :  { %152 = vrsqrt.f32 %v84_v35 }
 0x15e   :  { %v151_v42 = vpop.eup %150 }
 0x15f   :  { %v87_v43 = vmul.f32 %v151_v42, %v67_v16  ;;  %v88_v44 = vmul.f32 %v151_v42, %v68_v17 }
 0x161   :  { %v103_v47 = vmul.f32 %v96_v40, %v87_v43  ;;  %v104_v48 = vmul.f32 %v100_v41, %v88_v44 }
 0x162   :  { %v153_v49 = vpop.eup %152 }
 0x163   :  { %v89_v50 = vmul.f32 %v153_v49, %v69_v22  ;;  %v90_v51 = vmul.f32 %v153_v49, %v70_v23  ;;  %v119_v52 = vadd.f32 %v112_v45, %v103_v47  ;;  %v120_v53 = vadd.f32 %v116_v46, %v104_v48 }
 0x165   :  { %v105_v54 = vmul.f32 %v96_v40, %v89_v50  ;;  %v106_v55 = vmul.f32 %v100_v41, %v90_v51  ;;  %123 = vst [vmem:[#allocation7] sm:$0xff] %v119_v52  ;;  %124 = vst [vmem:[#allocation7 + $0x8] sm:$0xff] %v120_v53 }
 0x167   :  { %v121_v56 = vadd.f32 %v112_v45, %v105_v54  ;;  %v122_v57 = vadd.f32 %v116_v46, %v106_v55 }
 0x169   :  { %125 = vst [vmem:[#allocation7 + $0x10] sm:$0xff] %v121_v56  ;;  %126 = vst [vmem:[#allocation7 + $0x18] sm:$0xff] %v122_v57 }
 0x16a   :  { %209 = shalt.err (!%p206_p6)
}
 0x16b   :  { %s210_s20 = scalar_lea.hbm %s311_s4, 512 }
 0x16c   :  { %p211_p7 = scmp.ne.s32.totalorder %s311_s4, %s210_s20  ;;  %p214_p8 = scmp.lt.u32.totalorder %s210_s20, %s311_s4 }
 0x16e   :  { %p216_p9 = pnand %p214_p8, %p211_p7 }
 0x170   :  { %219 = shalt.err (!%p216_p9)
}
 0x171   :  { %138 = dma.vmem_to_hbm [thread:$0]  %s133_s2, 512, %s311_s4, [#allocation4], %s227_s25, %s227_s25, %s228_s26  }
 0x172   :  { %224 = dma.done.wait [#allocation4], 512  }
 0x173   :  { %225 = vsyncadd [#allocation4], 4294966784 }
 0x174   :  { %142 = vsyncpa [#allocation3], 1 }
 0x175   :  { %143 = vsyncpa [#allocation6], 1 }
 0x176   :  { %144 = vsyncpa [#allocation4], 1 }

</bundles_post_ra>
